<compile_context>
chip_gen: v7x
topology: tpu7x:2x2x1
jax: 0.10.0
libtpu: 0.0.40
codegen_flags: <defaults>
</compile_context>

<pallas_src>
import functools
import math

import jax
import jax.numpy as jnp
from jax.experimental import pallas as pl
from jax.experimental.pallas import tpu as pltpu


def _self_attention_kernel(num_heads, head_dim, compute_dtype, approx_recip,
                           x_ref, mask_ref,
                           wq_ref, bq_ref, wk_ref, bk_ref, wv_ref, bv_ref,
                           wo_ref, bo_ref, gamma_ref, beta_ref,
                           o_ref):
    """One grid step == one batch element (all heads fused)."""
    nh, d = num_heads, head_dim
    x = x_ref[0]                              # (S, H) f32 (kept f32 for residual)
    S, H = x.shape
    xc = x.astype(compute_dtype)              # single activation cast per step

    mask_row = mask_ref[0]                    # (1, S) additive mask over keys

    # ---- full-width projections: three dense (S,H)x(H,H) MXU matmuls ----
    q = (jnp.dot(xc, wq_ref[...], preferred_element_type=jnp.float32)
         + bq_ref[...]).astype(compute_dtype)
    k = (jnp.dot(xc, wk_ref[...], preferred_element_type=jnp.float32)
         + bk_ref[...]).astype(compute_dtype)
    v = (jnp.dot(xc, wv_ref[...], preferred_element_type=jnp.float32)
         + bv_ref[...]).astype(compute_dtype)

    wo = wo_ref[...]                          # resident weight, loaded once
    scale = 1.0 / math.sqrt(d)
    acc = jnp.zeros((S, H), jnp.float32)

    # ---- per-head attention (statically unrolled; nh is small).  The output
    # projection is folded per head:
    #   concat_h(ctx_h) @ Wo == sum_h ctx_h @ Wo[h*d:(h+1)*d, :]
    for h in range(nh):
        sl = slice(h * d, (h + 1) * d)
        qh, kh, vh = q[:, sl], k[:, sl], v[:, sl]

        # scaled dot-product scores: contract head_dim directly (no .T)
        s = jax.lax.dot_general(qh, kh, (((1,), (1,)), ((), ())),
                                preferred_element_type=jnp.float32) * scale
        s = s + mask_row                      # (S, S) + (1, S) broadcast over keys

        # numerically stable softmax in f32
        m = jnp.max(s, axis=-1, keepdims=True)
        e = jnp.exp(s - m)
        den = jnp.sum(e, axis=-1, keepdims=True)
        if approx_recip:
            p = e * pl.reciprocal(den, approx=True)   # EUP slot (bf16 path only)
        else:
            p = e / den                               # exact (f32 verification path)
        # attn_dropout: identity (eval mode)

        ctx_h = jnp.dot(p.astype(compute_dtype), vh,
                        preferred_element_type=jnp.float32)            # (S, d)
        acc = acc + jnp.dot(ctx_h.astype(compute_dtype), wo[sl, :],
                            preferred_element_type=jnp.float32)        # (S, H)

    # ---- output projection bias, residual, LayerNorm (once per step) ----
    hidden = acc + bo_ref[...]                # out_dropout: identity (eval mode)
    res = hidden + x
    mean = jnp.mean(res, axis=-1, keepdims=True)
    centered = res - mean
    var = jnp.mean(centered * centered, axis=-1, keepdims=True)   # biased, as torch
    inv = jax.lax.rsqrt(var + 1e-12)          # eps per module spec
    normed = centered * inv * gamma_ref[...] + beta_ref[...]
    o_ref[0] = normed.astype(o_ref.dtype)


def self_attention(x, mask, params, *, num_heads, use_bf16=True):
    """x: (B, S, H) f32, mask: (B, 1, 1, S) f32 additive mask."""
    B, S, H = x.shape
    if H % num_heads != 0:
        raise ValueError(f"hidden size {H} not a multiple of num_heads {num_heads}")
    d = H // num_heads
    wq, bq, wk, bk, wv, bv, wo, bo, gamma, beta = params

    compute_dtype = jnp.bfloat16 if use_bf16 else jnp.float32
    wq_c = wq.astype(compute_dtype)
    wk_c = wk.astype(compute_dtype)
    wv_c = wv.astype(compute_dtype)
    wo_c = wo.astype(compute_dtype)
    mask3 = mask.reshape(B, 1, S)             # drop the two size-1 dims to one

    kernel = functools.partial(_self_attention_kernel,
                               num_heads, d, compute_dtype, use_bf16)

    const = lambda shape: pl.BlockSpec(shape, lambda b: (0,) * len(shape))

    return pl.pallas_call(
        kernel,
        out_shape=jax.ShapeDtypeStruct((B, S, H), x.dtype),
        grid_spec=pltpu.PrefetchScalarGridSpec(
            num_scalar_prefetch=0,
            grid=(B,),
            in_specs=[
                pl.BlockSpec((1, S, H), lambda b: (b, 0, 0)),   # x
                pl.BlockSpec((1, 1, S), lambda b: (b, 0, 0)),   # additive key mask
                const((H, H)),    # Wq   (constant index map -> fetched once, resident)
                const((1, H)),    # bq
                const((H, H)),    # Wk
                const((1, H)),    # bk
                const((H, H)),    # Wv
                const((1, H)),    # bv
                const((H, H)),    # Wo
                const((1, H)),    # bo
                const((1, H)),    # layernorm gamma
                const((1, H)),    # layernorm beta
            ],
            out_specs=pl.BlockSpec((1, S, H), lambda b: (b, 0, 0)),
        ),
        compiler_params=pltpu.CompilerParams(
            dimension_semantics=("parallel",)),
    )(x, mask3, wq_c, bq, wk_c, bk, wv_c, bv, wo_c, bo, gamma, beta)


def reference(x, mask, params, *, num_heads):
    B, S, H = x.shape
    d = H // num_heads
    wq, bq, wk, bk, wv, bv, wo, bo, gamma, beta = params

    def split(t):  # (B,S,H) -> (B,heads,S,d)
        return t.reshape(B, S, num_heads, d).transpose(0, 2, 1, 3)

    q = split(x @ wq + bq)
    k = split(x @ wk + bk)
    v = split(x @ wv + bv)
    scores = jnp.einsum('bhqd,bhkd->bhqk', q, k) / math.sqrt(d) + mask
    probs = jax.nn.softmax(scores, axis=-1)
    ctx = jnp.einsum('bhqk,bhkd->bhqd', probs, v).transpose(0, 2, 1, 3).reshape(B, S, H)
    hidden = ctx @ wo + bo
    res = hidden + x
    mean = res.mean(-1, keepdims=True)
    var = ((res - mean) ** 2).mean(-1, keepdims=True)
    return (res - mean) * jax.lax.rsqrt(var + 1e-12) * gamma + beta


if __name__ == "__main__":
    B, S, H, num_heads = 2, 8, 32, 4
    key = jax.random.PRNGKey(0)
    keys = jax.random.split(key, 12)

    x = jax.random.normal(keys[0], (B, S, H), dtype=jnp.float32)
    # BERT-style additive mask: 0 for visible keys, -10000 for masked-out keys.
    key_visible = (jax.random.uniform(keys[1], (B, 1, 1, S)) > 0.2).astype(jnp.float32)
    mask = (1.0 - key_visible) * -10000.0

    def lin(k, fan_in, fan_out):
        return 0.02 * jax.random.normal(k, (fan_in, fan_out), dtype=jnp.float32)

    params = (
        lin(keys[2], H, H), 0.01 * jax.random.normal(keys[3], (1, H), dtype=jnp.float32),
        lin(keys[4], H, H), 0.01 * jax.random.normal(keys[5], (1, H), dtype=jnp.float32),
        lin(keys[6], H, H), 0.01 * jax.random.normal(keys[7], (1, H), dtype=jnp.float32),
        lin(keys[8], H, H), 0.01 * jax.random.normal(keys[9], (1, H), dtype=jnp.float32),
        jnp.ones((1, H), dtype=jnp.float32),   # layernorm gamma
        jnp.zeros((1, H), dtype=jnp.float32),  # layernorm beta
    )

    ref = reference(x, mask, params, num_heads=num_heads)

    # f32 path (tight check, exact softmax division)
    out_f32 = self_attention(x, mask, params, num_heads=num_heads, use_bf16=False)
    out_f32 = jax.block_until_ready(out_f32)
    assert out_f32.shape == (B, S, H)
    assert jnp.allclose(out_f32, ref, atol=1e-3, rtol=1e-3), "f32 kernel mismatch vs reference"

    # bf16 MXU path (loose check, production configuration)
    out_bf16 = self_attention(x, mask, params, num_heads=num_heads, use_bf16=True)
    out_bf16 = jax.block_until_ready(out_bf16)
    assert out_bf16.shape == (B, S, H)
    assert jnp.allclose(out_bf16, ref, atol=5e-2, rtol=5e-2), "bf16 kernel mismatch vs reference"

    print("KERNEL_OK")
</pallas_src>

<mosaic_0001>
module attributes {stable_mosaic.version = 11 : i64} {
  func.func @_self_attention_kernel(%arg0: i32, %arg1: memref<1x8x32xf32, #tpu.memory_space<vmem>>, %arg2: memref<1x1x8xf32, #tpu.memory_space<vmem>>, %arg3: memref<32x32xf32, #tpu.memory_space<vmem>>, %arg4: memref<1x32xf32, #tpu.memory_space<vmem>>, %arg5: memref<32x32xf32, #tpu.memory_space<vmem>>, %arg6: memref<1x32xf32, #tpu.memory_space<vmem>>, %arg7: memref<32x32xf32, #tpu.memory_space<vmem>>, %arg8: memref<1x32xf32, #tpu.memory_space<vmem>>, %arg9: memref<32x32xf32, #tpu.memory_space<vmem>>, %arg10: memref<1x32xf32, #tpu.memory_space<vmem>>, %arg11: memref<1x32xf32, #tpu.memory_space<vmem>>, %arg12: memref<1x32xf32, #tpu.memory_space<vmem>>, %arg13: memref<1x8x32xf32, #tpu.memory_space<vmem>>) attributes {dimension_semantics = [#tpu.dimension_semantics<parallel>], iteration_bounds = array<i64: 2>, scalar_prefetch = 0 : i64, scratch_operands = 0 : i64, tpu.core_type = #tpu.core_type<tc>, window_params = [{transform_indices = @transform_0, window_bounds = array<i64: 1, 8, 32>}, {transform_indices = @transform_1, window_bounds = array<i64: 1, 1, 8>}, {pipeline_mode = #tpu.pipeline_mode<synchronous>, transform_indices = @transform_2, window_bounds = array<i64: 32, 32>}, {pipeline_mode = #tpu.pipeline_mode<synchronous>, transform_indices = @transform_3, window_bounds = array<i64: 1, 32>}, {pipeline_mode = #tpu.pipeline_mode<synchronous>, transform_indices = @transform_4, window_bounds = array<i64: 32, 32>}, {pipeline_mode = #tpu.pipeline_mode<synchronous>, transform_indices = @transform_5, window_bounds = array<i64: 1, 32>}, {pipeline_mode = #tpu.pipeline_mode<synchronous>, transform_indices = @transform_6, window_bounds = array<i64: 32, 32>}, {pipeline_mode = #tpu.pipeline_mode<synchronous>, transform_indices = @transform_7, window_bounds = array<i64: 1, 32>}, {pipeline_mode = #tpu.pipeline_mode<synchronous>, transform_indices = @transform_8, window_bounds = array<i64: 32, 32>}, {pipeline_mode = #tpu.pipeline_mode<synchronous>, transform_indices = @transform_9, window_bounds = array<i64: 1, 32>}, {pipeline_mode = #tpu.pipeline_mode<synchronous>, transform_indices = @transform_10, window_bounds = array<i64: 1, 32>}, {pipeline_mode = #tpu.pipeline_mode<synchronous>, transform_indices = @transform_11, window_bounds = array<i64: 1, 32>}, {transform_indices = @transform_12, window_bounds = array<i64: 1, 8, 32>}]} {
    %c0 = arith.constant 0 : index
    %c0_0 = arith.constant 0 : index
    %c0_1 = arith.constant 0 : index
    %0 = vector.load %arg1[%c0, %c0_0, %c0_1] : memref<1x8x32xf32, #tpu.memory_space<vmem>>, vector<1x8x32xf32>
    %1 = vector.shape_cast %0 : vector<1x8x32xf32> to vector<8x32xf32>
    %c0_2 = arith.constant 0 : index
    %c0_3 = arith.constant 0 : index
    %c0_4 = arith.constant 0 : index
    %2 = vector.load %arg2[%c0_2, %c0_3, %c0_4] : memref<1x1x8xf32, #tpu.memory_space<vmem>>, vector<1x1x8xf32>
    %3 = vector.shape_cast %2 : vector<1x1x8xf32> to vector<1x8xf32>
    %c0_5 = arith.constant 0 : index
    %c0_6 = arith.constant 0 : index
    %4 = vector.load %arg3[%c0_5, %c0_6] : memref<32x32xf32, #tpu.memory_space<vmem>>, vector<32x32xf32>
    %cst = arith.constant dense<0.000000e+00> : vector<8x32xf32>
    %5 = tpu.matmul %1, %4, %cst {dimension_numbers = #tpu.dot_dimension_numbers<[1], [0], [0], [1], [0, 0, 1, 1], [], []>} : vector<8x32xf32>, vector<32x32xf32>, vector<8x32xf32> -> vector<8x32xf32>
    %c0_7 = arith.constant 0 : index
    %c0_8 = arith.constant 0 : index
    %6 = vector.load %arg4[%c0_7, %c0_8] : memref<1x32xf32, #tpu.memory_space<vmem>>, vector<1x32xf32>
    %7 = vector.broadcast %6 : vector<1x32xf32> to vector<8x32xf32>
    %8 = arith.addf %5, %7 : vector<8x32xf32>
    %c0_9 = arith.constant 0 : index
    %c0_10 = arith.constant 0 : index
    %9 = vector.load %arg5[%c0_9, %c0_10] : memref<32x32xf32, #tpu.memory_space<vmem>>, vector<32x32xf32>
    %cst_11 = arith.constant dense<0.000000e+00> : vector<8x32xf32>
    %10 = tpu.matmul %1, %9, %cst_11 {dimension_numbers = #tpu.dot_dimension_numbers<[1], [0], [0], [1], [0, 0, 1, 1], [], []>} : vector<8x32xf32>, vector<32x32xf32>, vector<8x32xf32> -> vector<8x32xf32>
    %c0_12 = arith.constant 0 : index
    %c0_13 = arith.constant 0 : index
    %11 = vector.load %arg6[%c0_12, %c0_13] : memref<1x32xf32, #tpu.memory_space<vmem>>, vector<1x32xf32>
    %12 = vector.broadcast %11 : vector<1x32xf32> to vector<8x32xf32>
    %13 = arith.addf %10, %12 : vector<8x32xf32>
    %c0_14 = arith.constant 0 : index
    %c0_15 = arith.constant 0 : index
    %14 = vector.load %arg7[%c0_14, %c0_15] : memref<32x32xf32, #tpu.memory_space<vmem>>, vector<32x32xf32>
    %cst_16 = arith.constant dense<0.000000e+00> : vector<8x32xf32>
    %15 = tpu.matmul %1, %14, %cst_16 {dimension_numbers = #tpu.dot_dimension_numbers<[1], [0], [0], [1], [0, 0, 1, 1], [], []>} : vector<8x32xf32>, vector<32x32xf32>, vector<8x32xf32> -> vector<8x32xf32>
    %c0_17 = arith.constant 0 : index
    %c0_18 = arith.constant 0 : index
    %16 = vector.load %arg8[%c0_17, %c0_18] : memref<1x32xf32, #tpu.memory_space<vmem>>, vector<1x32xf32>
    %17 = vector.broadcast %16 : vector<1x32xf32> to vector<8x32xf32>
    %18 = arith.addf %15, %17 : vector<8x32xf32>
    %c0_19 = arith.constant 0 : index
    %c0_20 = arith.constant 0 : index
    %19 = vector.load %arg9[%c0_19, %c0_20] : memref<32x32xf32, #tpu.memory_space<vmem>>, vector<32x32xf32>
    %cst_21 = arith.constant 0.000000e+00 : f32
    %20 = vector.broadcast %cst_21 : f32 to vector<8x32xf32>
    %21 = vector.extract_strided_slice %8 {offsets = [0, 0], sizes = [8, 8], strides = [1, 1]} : vector<8x32xf32> to vector<8x8xf32>
    %22 = vector.extract_strided_slice %13 {offsets = [0, 0], sizes = [8, 8], strides = [1, 1]} : vector<8x32xf32> to vector<8x8xf32>
    %23 = vector.extract_strided_slice %18 {offsets = [0, 0], sizes = [8, 8], strides = [1, 1]} : vector<8x32xf32> to vector<8x8xf32>
    %cst_22 = arith.constant dense<0.000000e+00> : vector<8x8xf32>
    %24 = tpu.matmul %21, %22, %cst_22 {dimension_numbers = #tpu.dot_dimension_numbers<[1], [1], [0], [0], [0, 0, 1, 0], [], []>} : vector<8x8xf32>, vector<8x8xf32>, vector<8x8xf32> -> vector<8x8xf32>
    %cst_23 = arith.constant 0.353553385 : f32
    %25 = vector.broadcast %cst_23 : f32 to vector<8x8xf32>
    %26 = arith.mulf %24, %25 : vector<8x8xf32>
    %27 = vector.broadcast %3 : vector<1x8xf32> to vector<8x8xf32>
    %28 = arith.addf %26, %27 : vector<8x8xf32>
    %cst_24 = arith.constant dense<0xFF800000> : vector<8xf32>
    %29 = vector.multi_reduction <maximumf>, %28, %cst_24 [1] : vector<8x8xf32> to vector<8xf32>
    %30 = vector.shape_cast %29 : vector<8xf32> to vector<8x1xf32>
    %31 = vector.broadcast %30 : vector<8x1xf32> to vector<8x8xf32>
    %32 = arith.subf %28, %31 : vector<8x8xf32>
    %33 = math.exp %32 : vector<8x8xf32>
    %cst_25 = arith.constant dense<0.000000e+00> : vector<8xf32>
    %34 = vector.multi_reduction <add>, %33, %cst_25 [1] : vector<8x8xf32> to vector<8xf32>
    %35 = vector.shape_cast %34 : vector<8xf32> to vector<8x1xf32>
    %36 = vector.broadcast %35 : vector<8x1xf32> to vector<8x8xf32>
    %37 = arith.divf %33, %36 : vector<8x8xf32>
    %cst_26 = arith.constant dense<0.000000e+00> : vector<8x8xf32>
    %38 = tpu.matmul %37, %23, %cst_26 {dimension_numbers = #tpu.dot_dimension_numbers<[1], [0], [0], [1], [0, 0, 1, 1], [], []>} : vector<8x8xf32>, vector<8x8xf32>, vector<8x8xf32> -> vector<8x8xf32>
    %39 = vector.extract_strided_slice %19 {offsets = [0, 0], sizes = [8, 32], strides = [1, 1]} : vector<32x32xf32> to vector<8x32xf32>
    %cst_27 = arith.constant dense<0.000000e+00> : vector<8x32xf32>
    %40 = tpu.matmul %38, %39, %cst_27 {dimension_numbers = #tpu.dot_dimension_numbers<[1], [0], [0], [1], [0, 0, 1, 1], [], []>} : vector<8x8xf32>, vector<8x32xf32>, vector<8x32xf32> -> vector<8x32xf32>
    %41 = arith.addf %20, %40 : vector<8x32xf32>
    %42 = vector.extract_strided_slice %8 {offsets = [0, 8], sizes = [8, 8], strides = [1, 1]} : vector<8x32xf32> to vector<8x8xf32>
    %43 = vector.extract_strided_slice %13 {offsets = [0, 8], sizes = [8, 8], strides = [1, 1]} : vector<8x32xf32> to vector<8x8xf32>
    %44 = vector.extract_strided_slice %18 {offsets = [0, 8], sizes = [8, 8], strides = [1, 1]} : vector<8x32xf32> to vector<8x8xf32>
    %cst_28 = arith.constant dense<0.000000e+00> : vector<8x8xf32>
    %45 = tpu.matmul %42, %43, %cst_28 {dimension_numbers = #tpu.dot_dimension_numbers<[1], [1], [0], [0], [0, 0, 1, 0], [], []>} : vector<8x8xf32>, vector<8x8xf32>, vector<8x8xf32> -> vector<8x8xf32>
    %cst_29 = arith.constant 0.353553385 : f32
    %46 = vector.broadcast %cst_29 : f32 to vector<8x8xf32>
    %47 = arith.mulf %45, %46 : vector<8x8xf32>
    %48 = vector.broadcast %3 : vector<1x8xf32> to vector<8x8xf32>
    %49 = arith.addf %47, %48 : vector<8x8xf32>
    %cst_30 = arith.constant dense<0xFF800000> : vector<8xf32>
    %50 = vector.multi_reduction <maximumf>, %49, %cst_30 [1] : vector<8x8xf32> to vector<8xf32>
    %51 = vector.shape_cast %50 : vector<8xf32> to vector<8x1xf32>
    %52 = vector.broadcast %51 : vector<8x1xf32> to vector<8x8xf32>
    %53 = arith.subf %49, %52 : vector<8x8xf32>
    %54 = math.exp %53 : vector<8x8xf32>
    %cst_31 = arith.constant dense<0.000000e+00> : vector<8xf32>
    %55 = vector.multi_reduction <add>, %54, %cst_31 [1] : vector<8x8xf32> to vector<8xf32>
    %56 = vector.shape_cast %55 : vector<8xf32> to vector<8x1xf32>
    %57 = vector.broadcast %56 : vector<8x1xf32> to vector<8x8xf32>
    %58 = arith.divf %54, %57 : vector<8x8xf32>
    %cst_32 = arith.constant dense<0.000000e+00> : vector<8x8xf32>
    %59 = tpu.matmul %58, %44, %cst_32 {dimension_numbers = #tpu.dot_dimension_numbers<[1], [0], [0], [1], [0, 0, 1, 1], [], []>} : vector<8x8xf32>, vector<8x8xf32>, vector<8x8xf32> -> vector<8x8xf32>
    %60 = vector.extract_strided_slice %19 {offsets = [8, 0], sizes = [8, 32], strides = [1, 1]} : vector<32x32xf32> to vector<8x32xf32>
    %cst_33 = arith.constant dense<0.000000e+00> : vector<8x32xf32>
    %61 = tpu.matmul %59, %60, %cst_33 {dimension_numbers = #tpu.dot_dimension_numbers<[1], [0], [0], [1], [0, 0, 1, 1], [], []>} : vector<8x8xf32>, vector<8x32xf32>, vector<8x32xf32> -> vector<8x32xf32>
    %62 = arith.addf %41, %61 : vector<8x32xf32>
    %63 = vector.extract_strided_slice %8 {offsets = [0, 16], sizes = [8, 8], strides = [1, 1]} : vector<8x32xf32> to vector<8x8xf32>
    %64 = vector.extract_strided_slice %13 {offsets = [0, 16], sizes = [8, 8], strides = [1, 1]} : vector<8x32xf32> to vector<8x8xf32>
    %65 = vector.extract_strided_slice %18 {offsets = [0, 16], sizes = [8, 8], strides = [1, 1]} : vector<8x32xf32> to vector<8x8xf32>
    %cst_34 = arith.constant dense<0.000000e+00> : vector<8x8xf32>
    %66 = tpu.matmul %63, %64, %cst_34 {dimension_numbers = #tpu.dot_dimension_numbers<[1], [1], [0], [0], [0, 0, 1, 0], [], []>} : vector<8x8xf32>, vector<8x8xf32>, vector<8x8xf32> -> vector<8x8xf32>
    %cst_35 = arith.constant 0.353553385 : f32
    %67 = vector.broadcast %cst_35 : f32 to vector<8x8xf32>
    %68 = arith.mulf %66, %67 : vector<8x8xf32>
    %69 = vector.broadcast %3 : vector<1x8xf32> to vector<8x8xf32>
    %70 = arith.addf %68, %69 : vector<8x8xf32>
    %cst_36 = arith.constant dense<0xFF800000> : vector<8xf32>
    %71 = vector.multi_reduction <maximumf>, %70, %cst_36 [1] : vector<8x8xf32> to vector<8xf32>
    %72 = vector.shape_cast %71 : vector<8xf32> to vector<8x1xf32>
    %73 = vector.broadcast %72 : vector<8x1xf32> to vector<8x8xf32>
    %74 = arith.subf %70, %73 : vector<8x8xf32>
    %75 = math.exp %74 : vector<8x8xf32>
    %cst_37 = arith.constant dense<0.000000e+00> : vector<8xf32>
    %76 = vector.multi_reduction <add>, %75, %cst_37 [1] : vector<8x8xf32> to vector<8xf32>
    %77 = vector.shape_cast %76 : vector<8xf32> to vector<8x1xf32>
    %78 = vector.broadcast %77 : vector<8x1xf32> to vector<8x8xf32>
    %79 = arith.divf %75, %78 : vector<8x8xf32>
    %cst_38 = arith.constant dense<0.000000e+00> : vector<8x8xf32>
    %80 = tpu.matmul %79, %65, %cst_38 {dimension_numbers = #tpu.dot_dimension_numbers<[1], [0], [0], [1], [0, 0, 1, 1], [], []>} : vector<8x8xf32>, vector<8x8xf32>, vector<8x8xf32> -> vector<8x8xf32>
    %81 = vector.extract_strided_slice %19 {offsets = [16, 0], sizes = [8, 32], strides = [1, 1]} : vector<32x32xf32> to vector<8x32xf32>
    %cst_39 = arith.constant dense<0.000000e+00> : vector<8x32xf32>
    %82 = tpu.matmul %80, %81, %cst_39 {dimension_numbers = #tpu.dot_dimension_numbers<[1], [0], [0], [1], [0, 0, 1, 1], [], []>} : vector<8x8xf32>, vector<8x32xf32>, vector<8x32xf32> -> vector<8x32xf32>
    %83 = arith.addf %62, %82 : vector<8x32xf32>
    %84 = vector.extract_strided_slice %8 {offsets = [0, 24], sizes = [8, 8], strides = [1, 1]} : vector<8x32xf32> to vector<8x8xf32>
    %85 = vector.extract_strided_slice %13 {offsets = [0, 24], sizes = [8, 8], strides = [1, 1]} : vector<8x32xf32> to vector<8x8xf32>
    %86 = vector.extract_strided_slice %18 {offsets = [0, 24], sizes = [8, 8], strides = [1, 1]} : vector<8x32xf32> to vector<8x8xf32>
    %cst_40 = arith.constant dense<0.000000e+00> : vector<8x8xf32>
    %87 = tpu.matmul %84, %85, %cst_40 {dimension_numbers = #tpu.dot_dimension_numbers<[1], [1], [0], [0], [0, 0, 1, 0], [], []>} : vector<8x8xf32>, vector<8x8xf32>, vector<8x8xf32> -> vector<8x8xf32>
    %cst_41 = arith.constant 0.353553385 : f32
    %88 = vector.broadcast %cst_41 : f32 to vector<8x8xf32>
    %89 = arith.mulf %87, %88 : vector<8x8xf32>
    %90 = vector.broadcast %3 : vector<1x8xf32> to vector<8x8xf32>
    %91 = arith.addf %89, %90 : vector<8x8xf32>
    %cst_42 = arith.constant dense<0xFF800000> : vector<8xf32>
    %92 = vector.multi_reduction <maximumf>, %91, %cst_42 [1] : vector<8x8xf32> to vector<8xf32>
    %93 = vector.shape_cast %92 : vector<8xf32> to vector<8x1xf32>
    %94 = vector.broadcast %93 : vector<8x1xf32> to vector<8x8xf32>
    %95 = arith.subf %91, %94 : vector<8x8xf32>
    %96 = math.exp %95 : vector<8x8xf32>
    %cst_43 = arith.constant dense<0.000000e+00> : vector<8xf32>
    %97 = vector.multi_reduction <add>, %96, %cst_43 [1] : vector<8x8xf32> to vector<8xf32>
    %98 = vector.shape_cast %97 : vector<8xf32> to vector<8x1xf32>
    %99 = vector.broadcast %98 : vector<8x1xf32> to vector<8x8xf32>
    %100 = arith.divf %96, %99 : vector<8x8xf32>
    %cst_44 = arith.constant dense<0.000000e+00> : vector<8x8xf32>
    %101 = tpu.matmul %100, %86, %cst_44 {dimension_numbers = #tpu.dot_dimension_numbers<[1], [0], [0], [1], [0, 0, 1, 1], [], []>} : vector<8x8xf32>, vector<8x8xf32>, vector<8x8xf32> -> vector<8x8xf32>
    %102 = vector.extract_strided_slice %19 {offsets = [24, 0], sizes = [8, 32], strides = [1, 1]} : vector<32x32xf32> to vector<8x32xf32>
    %cst_45 = arith.constant dense<0.000000e+00> : vector<8x32xf32>
    %103 = tpu.matmul %101, %102, %cst_45 {dimension_numbers = #tpu.dot_dimension_numbers<[1], [0], [0], [1], [0, 0, 1, 1], [], []>} : vector<8x8xf32>, vector<8x32xf32>, vector<8x32xf32> -> vector<8x32xf32>
    %104 = arith.addf %83, %103 : vector<8x32xf32>
    %c0_46 = arith.constant 0 : index
    %c0_47 = arith.constant 0 : index
    %105 = vector.load %arg10[%c0_46, %c0_47] : memref<1x32xf32, #tpu.memory_space<vmem>>, vector<1x32xf32>
    %106 = vector.broadcast %105 : vector<1x32xf32> to vector<8x32xf32>
    %107 = arith.addf %104, %106 : vector<8x32xf32>
    %108 = arith.addf %107, %1 : vector<8x32xf32>
    %cst_48 = arith.constant dense<0.000000e+00> : vector<8xf32>
    %109 = vector.multi_reduction <add>, %108, %cst_48 [1] : vector<8x32xf32> to vector<8xf32>
    %110 = vector.shape_cast %109 : vector<8xf32> to vector<8x1xf32>
    %cst_49 = arith.constant 3.200000e+01 : f32
    %111 = vector.broadcast %cst_49 : f32 to vector<8x1xf32>
    %112 = arith.divf %110, %111 : vector<8x1xf32>
    %113 = vector.broadcast %112 : vector<8x1xf32> to vector<8x32xf32>
    %114 = arith.subf %108, %113 : vector<8x32xf32>
    %115 = arith.mulf %114, %114 : vector<8x32xf32>
    %cst_50 = arith.constant dense<0.000000e+00> : vector<8xf32>
    %116 = vector.multi_reduction <add>, %115, %cst_50 [1] : vector<8x32xf32> to vector<8xf32>
    %117 = vector.shape_cast %116 : vector<8xf32> to vector<8x1xf32>
    %cst_51 = arith.constant 3.200000e+01 : f32
    %118 = vector.broadcast %cst_51 : f32 to vector<8x1xf32>
    %119 = arith.divf %117, %118 : vector<8x1xf32>
    %cst_52 = arith.constant 9.99999996E-13 : f32
    %120 = vector.broadcast %cst_52 : f32 to vector<8x1xf32>
    %121 = arith.addf %119, %120 : vector<8x1xf32>
    %122 = math.rsqrt %121 : vector<8x1xf32>
    %123 = vector.broadcast %122 : vector<8x1xf32> to vector<8x32xf32>
    %124 = arith.mulf %114, %123 : vector<8x32xf32>
    %c0_53 = arith.constant 0 : index
    %c0_54 = arith.constant 0 : index
    %125 = vector.load %arg11[%c0_53, %c0_54] : memref<1x32xf32, #tpu.memory_space<vmem>>, vector<1x32xf32>
    %126 = vector.broadcast %125 : vector<1x32xf32> to vector<8x32xf32>
    %127 = arith.mulf %124, %126 : vector<8x32xf32>
    %c0_55 = arith.constant 0 : index
    %c0_56 = arith.constant 0 : index
    %128 = vector.load %arg12[%c0_55, %c0_56] : memref<1x32xf32, #tpu.memory_space<vmem>>, vector<1x32xf32>
    %129 = vector.broadcast %128 : vector<1x32xf32> to vector<8x32xf32>
    %130 = arith.addf %127, %129 : vector<8x32xf32>
    %c0_57 = arith.constant 0 : index
    %c0_58 = arith.constant 0 : index
    %c0_59 = arith.constant 0 : index
    %131 = vector.load %arg13[%c0_57, %c0_58, %c0_59] : memref<1x8x32xf32, #tpu.memory_space<vmem>>, vector<1x8x32xf32>
    %132 = vector.shape_cast %131 : vector<1x8x32xf32> to vector<8x32xf32>
    %133 = vector.shape_cast %130 : vector<8x32xf32> to vector<1x8x32xf32>
    tpu.vector_store %arg13[%c0_57, %c0_58, %c0_59], %133 {strides = array<i32>} : memref<1x8x32xf32, #tpu.memory_space<vmem>>, vector<1x8x32xf32>,
    return
  }
  func.func @transform_0(%arg0: i32) -> (i32, i32, i32) {
    %c0_i32 = arith.constant 0 : i32
    %c0_i32_0 = arith.constant 0 : i32
    %c0_i32_1 = arith.constant 0 : i32
    return %arg0, %c0_i32, %c0_i32_0 : i32, i32, i32
  }
  func.func @transform_1(%arg0: i32) -> (i32, i32, i32) {
    %c0_i32 = arith.constant 0 : i32
    %c0_i32_0 = arith.constant 0 : i32
    %c0_i32_1 = arith.constant 0 : i32
    return %arg0, %c0_i32, %c0_i32_0 : i32, i32, i32
  }
  func.func @transform_2(%arg0: i32) -> (i32, i32) {
    %c0_i32 = arith.constant 0 : i32
    %c0_i32_0 = arith.constant 0 : i32
    %c0_i32_1 = arith.constant 0 : i32
    return %c0_i32, %c0_i32_0 : i32, i32
  }
  func.func @transform_3(%arg0: i32) -> (i32, i32) {
    %c0_i32 = arith.constant 0 : i32
    %c0_i32_0 = arith.constant 0 : i32
    %c0_i32_1 = arith.constant 0 : i32
    return %c0_i32, %c0_i32_0 : i32, i32
  }
  func.func @transform_4(%arg0: i32) -> (i32, i32) {
    %c0_i32 = arith.constant 0 : i32
    %c0_i32_0 = arith.constant 0 : i32
    %c0_i32_1 = arith.constant 0 : i32
    return %c0_i32, %c0_i32_0 : i32, i32
  }
  func.func @transform_5(%arg0: i32) -> (i32, i32) {
    %c0_i32 = arith.constant 0 : i32
    %c0_i32_0 = arith.constant 0 : i32
    %c0_i32_1 = arith.constant 0 : i32
    return %c0_i32, %c0_i32_0 : i32, i32
  }
  func.func @transform_6(%arg0: i32) -> (i32, i32) {
    %c0_i32 = arith.constant 0 : i32
    %c0_i32_0 = arith.constant 0 : i32
    %c0_i32_1 = arith.constant 0 : i32
    return %c0_i32, %c0_i32_0 : i32, i32
  }
  func.func @transform_7(%arg0: i32) -> (i32, i32) {
    %c0_i32 = arith.constant 0 : i32
    %c0_i32_0 = arith.constant 0 : i32
    %c0_i32_1 = arith.constant 0 : i32
    return %c0_i32, %c0_i32_0 : i32, i32
  }
  func.func @transform_8(%arg0: i32) -> (i32, i32) {
    %c0_i32 = arith.constant 0 : i32
    %c0_i32_0 = arith.constant 0 : i32
    %c0_i32_1 = arith.constant 0 : i32
    return %c0_i32, %c0_i32_0 : i32, i32
  }
  func.func @transform_9(%arg0: i32) -> (i32, i32) {
    %c0_i32 = arith.constant 0 : i32
    %c0_i32_0 = arith.constant 0 : i32
    %c0_i32_1 = arith.constant 0 : i32
    return %c0_i32, %c0_i32_0 : i32, i32
  }
  func.func @transform_10(%arg0: i32) -> (i32, i32) {
    %c0_i32 = arith.constant 0 : i32
    %c0_i32_0 = arith.constant 0 : i32
    %c0_i32_1 = arith.constant 0 : i32
    return %c0_i32, %c0_i32_0 : i32, i32
  }
  func.func @transform_11(%arg0: i32) -> (i32, i32) {
    %c0_i32 = arith.constant 0 : i32
    %c0_i32_0 = arith.constant 0 : i32
    %c0_i32_1 = arith.constant 0 : i32
    return %c0_i32, %c0_i32_0 : i32, i32
  }
  func.func @transform_12(%arg0: i32) -> (i32, i32, i32) {
    %c0_i32 = arith.constant 0 : i32
    %c0_i32_0 = arith.constant 0 : i32
    %c0_i32_1 = arith.constant 0 : i32
    return %arg0, %c0_i32, %c0_i32_0 : i32, i32, i32
  }
}

</mosaic_0001>

<bundles_post_ra>
// kernel: tpu_custom_call.1
= control target key start
LH: loop header
LB: loop body
LE: loop exit
PB: predicated region body
PF: predicated region fallthrough
CT: control target
= control target key end

     0   :  { %s2920_s0 = inlined_call_operand.hbm [shape: f32[2,8,32], index: 0, kind: input, shape index: {}]   ;;  %s2921_s1 = inlined_call_operand.vmem [shape: f32[2,1,8], index: 1, kind: input, shape index: {}]   ;;  %s2922_s2 = inlined_call_operand.hbm [shape: f32[32,32], index: 2, kind: input, shape index: {}]   ;;  %s2923_s3 = inlined_call_operand.vmem [shape: f32[1,32], index: 3, kind: input, shape index: {}]   ;;  %s2924_s4 = inlined_call_operand.hbm [shape: f32[32,32], index: 4, kind: input, shape index: {}]   ;;  %s2925_s5 = inlined_call_operand.vmem [shape: f32[1,32], index: 5, kind: input, shape index: {}]   ;;  %s2926_s6 = inlined_call_operand.hbm [shape: f32[32,32], index: 6, kind: input, shape index: {}]   ;;  %s2927_s7 = inlined_call_operand.vmem [shape: f32[1,32], index: 7, kind: input, shape index: {}]   ;;  %s2928_s8 = inlined_call_operand.hbm [shape: f32[32,32], index: 8, kind: input, shape index: {}]   ;;  %s2929_s9 = inlined_call_operand.vmem [shape: f32[1,32], index: 9, kind: input, shape index: {}]   ;;  %s2930_s10 = inlined_call_operand.vmem [shape: f32[1,32], index: 10, kind: input, shape index: {}]   ;;  %s2931_s11 = inlined_call_operand.vmem [shape: f32[1,32], index: 11, kind: input, shape index: {}]   ;;  %s2932_s12 = inlined_call_operand.hbm [shape: f32[2,8,32], index: 12, kind: output, shape index: {}]  }
   0x1   :  { %2937 = sst [smem:[#allocation16_spill]] %s2920_s0 }
   0x2   :  { %2938 = sst [smem:[#allocation17_spill]] %s2922_s2 }
   0x3   :  { %2939 = sst [smem:[#allocation18_spill]] %s2929_s9 }
   0x4   :  { %2940 = sst [smem:[#allocation19_spill]] %s2930_s10 }
   0x5   :  { %2941 = sst [smem:[#allocation20_spill]] %s2931_s11 }
   0x6   :  { %2942 = sst [smem:[#allocation21_spill]] %s2932_s12 }
   0x7   :  { %17 = vsyncpa [#allocation3], 0 }
   0x8   :  { %19 = vsyncpa [#allocation3 + $0x1], 0 }
   0x9   :  { %20 = vsyncpa [#allocation6], 0 }
   0xa   :  { %21 = vsyncpa [#allocation9], 0 }
   0xb   :  { %22 = vsyncpa [#allocation4], 0 }
   0xc   :  { %24 = vsyncpa [#allocation4 + $0x1], 0  ;;  %s2496_s21 = smov 0   ;;  %s2498_s22 = smov 0  }
   0xd   :  { %s2500_s23 = smov 0   ;;  %s2502_s24 = smov 0  }
   0xe LB: > { %s2417_s25 = smov [#allocation5]   ;;  %s2517_s27 = sadd.s32 4294967295, %s2415_s24   ;;  %s2415_s24 = sphi %s2502_s24, %s2969_s24   ;;  %s2411_s23 = sphi %s2500_s23, %s2968_s23   ;;  %s2407_s22 = sphi %s2498_s22, %s2967_s22   ;;  %s2403_s21 = sphi %s2496_s21, %s2966_s21  }
   0xf   : > { %s335_s26 = sshll.u32 %s2417_s25, 4  ;;  %p1891_p0 = scmp.ge.s32.totalorder %s2415_s24, 1  ;;  %s2522_s26 = int_to_ptr.vmem [resolvable:$true] %s335_s26 }
  0x10   : > { %p2934_p1 = scmp.eq.s32.totalorder %s2517_s27, 0  ;;  %p323_p2 = scmp.lt.s32.totalorder %s2415_s24, 3 }
  0x11   : > { %s2418_s29 = smov [#allocation8]   ;;  %s2419_s14 = smov [#allocation7]  }
  0x12   : > { %p2524_p3 = pnand %p1891_p0, %p323_p2  ;;  %s367_s30 = sshll.u32 %s2418_s29, 4  ;;  %s2537_s30 = int_to_ptr.vmem [resolvable:$true] %s367_s30 }
  0x13   : > { %s351_s15 = sshll.u32 %s2419_s14, 4  ;;  %s2945_s2 = sld [smem:[#allocation17_spill]]  ;;  %s2539_s15 = int_to_ptr.vmem [resolvable:$true] %s351_s15 }
  0x14   : > { %s2943_s28 = scalar_select %p2524_p3, 1, 0 }
  0x15   : > { %p2106_p5 = pneg %p2524_p3 }
  0x17   : > { %p2533_p6 = pnand %p2106_p5, %p2934_p1 }
  0x19   : > { %s2199_s18 = scalar_lea.hbm %s2945_s2, 512  ;;  %p2549_p8 = pneg %p2533_p6 }
  0x1a   : > { %p2200_p7 = scmp.ne.s32.totalorder %s2945_s2, %s2199_s18  ;;  %p2206_p11 = scmp.lt.u32.totalorder %s2199_s18, %s2945_s2 }
  0x1c   : > { %p2202_p9 = pnand %p2549_p8, %p2200_p7 }
  0x1e   : > { %p2203_p10 = pneg %p2202_p9 }
  0x20   : > { %p2208_p12 = pnand %p2206_p11, %p2203_p10 }
  0x22   : > { %2211 = shalt.err (!%p2208_p12)
}
  0x23   : > { %s2212_s16 = scalar_lea.vmem %s2522_s26, 512  ;;  %p2220_p5 = scmp.lt.s32.totalorder %s2522_s26, %s2522_s26 }
  0x24   : > { %p2213_p13 = scmp.ne.s32.totalorder %s2522_s26, %s2212_s16  ;;  %p2221_p4 = scmp.lt.s32.totalorder %s2212_s16, %s2212_s16 }
  0x26   : > { %p2215_p0 = pnand %p2213_p13, %p2549_p8  ;;  %p2222_p7 = por %p2221_p4, %p2220_p5 }
  0x28   : > { %p2216_p2 = pneg %p2215_p0 }
  0x2a   : > { %p2223_p9 = pnand %p2222_p7, %p2216_p2 }
  0x2c   : > { %2226 = shalt.err (!%p2223_p9)
}
  0x2d   : > { %s2420_s17 = smov 128   ;;  %s2421_s18 = smov 8  }
  0x2e   : > { %2109 = dma.hbm_to_vmem [thread:$0]  (!%p2533_p6), %s2945_s2, 512, %s2522_s26, [#allocation6], %s2420_s17, %s2420_s17, %s2421_s18  }
  0x2f   : > { %s2227_s16 = scalar_lea.hbm %s2926_s6, 512 }
  0x30   : > { %p2228_p4 = scmp.ne.s32.totalorder %s2926_s6, %s2227_s16  ;;  %p2234_p12 = scmp.lt.u32.totalorder %s2227_s16, %s2926_s6 }
  0x32   : > { %p2230_p10 = pnand %p2228_p4, %p2549_p8 }
  0x34   : > { %p2231_p11 = pneg %p2230_p10 }
  0x36   : > { %p2236_p13 = pnand %p2234_p12, %p2231_p11 }
  0x38   : > { %2239 = shalt.err (!%p2236_p13)
}
  0x39   : > { %s2240_s26 = scalar_lea.vmem %s2537_s30, 512  ;;  %p2248_p7 = scmp.lt.s32.totalorder %s2537_s30, %s2537_s30 }
  0x3a   : > { %p2241_p0 = scmp.ne.s32.totalorder %s2537_s30, %s2240_s26  ;;  %p2249_p9 = scmp.lt.s32.totalorder %s2240_s26, %s2240_s26 }
  0x3c   : > { %p2243_p2 = pnand %p2241_p0, %p2549_p8  ;;  %p2250_p4 = por %p2249_p9, %p2248_p7 }
  0x3e   : > { %p2244_p5 = pneg %p2243_p2 }
  0x40   : > { %p2251_p10 = pnand %p2250_p4, %p2244_p5 }
  0x42   : > { %2254 = shalt.err (!%p2251_p10)
}
  0x43   : > { %2115 = dma.hbm_to_vmem [thread:$0]  (!%p2533_p6), %s2926_s6, 512, %s2537_s30, [#allocation9], %s2420_s17, %s2420_s17, %s2421_s18  }
  0x44   : > { %s2255_s19 = scalar_lea.hbm %s2924_s4, 512 }
  0x45   : > { %p2256_p11 = scmp.ne.s32.totalorder %s2924_s4, %s2255_s19  ;;  %p2262_p0 = scmp.lt.u32.totalorder %s2255_s19, %s2924_s4 }
  0x47   : > { %p2258_p12 = pnand %p2256_p11, %p2549_p8 }
  0x49   : > { %p2259_p13 = pneg %p2258_p12 }
  0x4b   : > { %p2264_p2 = pnand %p2262_p0, %p2259_p13 }
  0x4d   : > { %2267 = shalt.err (!%p2264_p2)
}
  0x4e   : > { %s2268_s30 = scalar_lea.vmem %s2539_s15, 512  ;;  %p2276_p4 = scmp.lt.s32.totalorder %s2539_s15, %s2539_s15 }
  0x4f   : > { %p2269_p5 = scmp.ne.s32.totalorder %s2539_s15, %s2268_s30  ;;  %p2277_p10 = scmp.lt.s32.totalorder %s2268_s30, %s2268_s30 }
  0x51   : > { %p2271_p7 = pnand %p2269_p5, %p2549_p8  ;;  %p2278_p11 = por %p2277_p10, %p2276_p4 }
  0x53   : > { %p2272_p9 = pneg %p2271_p7 }
  0x55   : > { %p2279_p12 = pnand %p2278_p11, %p2272_p9 }
  0x57   : > { %2282 = shalt.err (!%p2279_p12)
}
  0x58   : > { %2112 = dma.hbm_to_vmem [thread:$0]  (!%p2533_p6), %s2924_s4, 512, %s2539_s15, [#allocation6], %s2420_s17, %s2420_s17, %s2421_s18  }
  0x59   : > { %s2422_s10 = smov [#allocation10]   ;;  %s2283_s20 = scalar_lea.hbm %s2928_s8, 512 }
  0x5a   : > { %s383_s11 = sshll.u32 %s2422_s10, 4  ;;  %p2284_p13 = scmp.ne.s32.totalorder %s2928_s8, %s2283_s20  ;;  %s384_s11 = int_to_ptr.vmem [resolvable:$true] %s383_s11 }
  0x5b   : > { %p2290_p5 = scmp.lt.u32.totalorder %s2283_s20, %s2928_s8 }
  0x5c   : > { %p2286_p0 = pnand %p2284_p13, %p2549_p8 }
  0x5e   : > { %p2287_p2 = pneg %p2286_p0 }
  0x60   : > { %p2292_p7 = pnand %p2290_p5, %p2287_p2 }
  0x62   : > { %2295 = shalt.err (!%p2292_p7)
}
  0x63   : > { %s2296_s15 = scalar_lea.vmem %s384_s11, 512  ;;  %p2304_p11 = scmp.lt.s32.totalorder %s384_s11, %s384_s11 }
  0x64   : > { %p2297_p9 = scmp.ne.s32.totalorder %s384_s11, %s2296_s15  ;;  %p2305_p12 = scmp.lt.s32.totalorder %s2296_s15, %s2296_s15 }
  0x66   : > { %p2299_p4 = pnand %p2297_p9, %p2549_p8  ;;  %p2306_p1 = por %p2305_p12, %p2304_p11 }
  0x68   : > { %p2300_p10 = pneg %p2299_p4 }
  0x6a   : > { %p2307_p3 = pnand %p2306_p1, %p2300_p10 }
  0x6c   : > { %2310 = shalt.err (!%p2307_p3)
}
  0x6d   : > { %2118 = dma.hbm_to_vmem [thread:$0]  (!%p2533_p6), %s2928_s8, 512, %s384_s11, [#allocation9], %s2420_s17, %s2420_s17, %s2421_s18  }
  0x6e   : > { %s1890_s13 = sadd.s32 4294967294, %s2415_s24   ;;  %s2648_s25 = sadd.s32 1, %s2415_s24  }
  0x6f   : > { %s34_s10 = ssub.s32 %s2415_s24, %s2648_s25  ;;  %s37_s12 = sadd.s32 1, %s2411_s23 }
  0x70   : > { %p35_p1 = scmp.eq.s32.totalorder %s34_s10, 0  ;;  %p44_p3 = scmp.ne.s32.totalorder %s2411_s23, %s2407_s22 }
  0x71   : > { %p45_p8 = scmp.eq.s32.totalorder %s2415_s24, 0  ;;  %p50_p13 = scmp.ne.s32.totalorder %s2407_s22, %s2403_s21 }
  0x72   : > { %s2659_s19 = scalar_select %p35_p1, %s2411_s23, %s37_s12  }
  0x73   : > { %p2661_p0 = por %p45_p8, %p44_p3  ;;  %p2948_p2 = scmp.eq.s32.totalorder %s2517_s27, 0 }
  0x74   : > { %p310_p5 = scmp.eq.s32.totalorder %s2517_s27, 1  ;;  %p316_p7 = scmp.eq.s32.totalorder %s1890_s13, 1 }
  0x75   : > { %p2667_p6 = por %p2948_p2, %p50_p13  ;;  %p2131_p9 = scmp.lt.s32.totalorder %s2415_s24, 2 }
  0x76   : > { %s406_s18 = sand.u32 1, %s2411_s23   ;;  %p2674_p4 = por %p310_p5, %p44_p3 }
  0x77   : > { %p2678_p10 = por %p316_p7, %p50_p13  ;;  %s1897_s14 = sshll.u32 %s406_s18, 3 }
  0x78   : > { %s2950_s11 = scalar_select %p2674_p4, 1, 0 }
  0x79   : > { %s2951_s29 = scalar_select %p2678_p10, 1, 0 }
  0x7a   : > { %s1898_s16 = sshll.u32 %s2415_s24, 7  ;;  %s2952_s0 = sld [smem:[#allocation16_spill]] }
  0x7b   : > { %s410_s9 = scalar_lea.vmem [#allocation2], %s1897_s14  ;;  %p2692_p11 = pnand %p2131_p9, %p2661_p0 }
  0x7c   : > { %s417_s13 = sshll.u32 %s410_s9, 4  ;;  %s407_s12 = scalar_lea.sflag [#allocation3], %s406_s18  ;;  %s2688_s13 = int_to_ptr.vmem [resolvable:$true] %s417_s13 }
  0x7d   : > { %p2313_p1 = pneg %p2692_p11 }
  0x80   : > { %s2686_s26 = scalar_lea.hbm %s2952_s0, %s1898_s16  ;;  %s2316_s30 = scalar_lea.hbm %s2952_s0, 256 }
  0x81   : > { %s2311_s2 = scalar_lea.hbm %s2686_s26, 128  ;;  %p2317_p13 = scmp.lt.u32.totalorder %s2686_s26, %s2952_s0 }
  0x82   : > { %p2312_p12 = scmp.ne.s32.totalorder %s2686_s26, %s2311_s2  ;;  %p2318_p0 = scmp.lt.u32.totalorder %s2316_s30, %s2311_s2 }
  0x83   : > { %p2320_p5 = scmp.lt.u32.totalorder %s2311_s2, %s2686_s26 }
  0x84   : > { %p2314_p3 = pnand %p2313_p1, %p2312_p12  ;;  %p2319_p2 = por %p2318_p0, %p2317_p13 }
  0x86   : > { %p2315_p8 = pneg %p2314_p3  ;;  %p2321_p7 = por %p2320_p5, %p2319_p2 }
  0x88   : > { %p2322_p9 = pnand %p2321_p7, %p2315_p8 }
  0x8a   : > { %2325 = shalt.err (!%p2322_p9)
}
  0x8b   : > { %s2326_s18 = scalar_lea.vmem %s2688_s13, 128  ;;  %s2423_s9 = smov [#allocation2]  }
  0x8c   : > { %p2327_p12 = scmp.ne.s32.totalorder %s2688_s13, %s2326_s18  ;;  %s2331_s14 = sshll.u32 %s2423_s9, 4  ;;  %s2332_s14 = int_to_ptr.vmem [resolvable:$false] %s2331_s14 }
  0x8d   : > { %s2333_s16 = scalar_lea.vmem %s2332_s14, 256  ;;  %p2334_p4 = scmp.lt.s32.totalorder %s2688_s13, %s2332_s14 }
  0x8e   : > { %p2329_p3 = pnand %p2327_p12, %p2313_p1  ;;  %p2335_p13 = scmp.lt.s32.totalorder %s2333_s16, %s2326_s18 }
  0x90   : > { %p2330_p10 = pneg %p2329_p3  ;;  %p2336_p0 = por %p2335_p13, %p2334_p4 }
  0x92   : > { %p2337_p2 = pnand %p2336_p0, %p2330_p10 }
  0x94   : > { %2340 = shalt.err (!%p2337_p2)
}
  0x95   : > { %2122 = dma.hbm_to_vmem [thread:$0]  (!%p2692_p11), %s2686_s26, 128, %s2688_s13, %s407_s12  }
  0x96   : > { %p2954_p8 = scmp.ne.s32.totalorder %s2943_s28, 0 }
  0x97   : > { %s2724_s2 = sand.u32 (!%p2954_p8), 1, %s2407_s22  }
  0x98   : > { %432 = sbr.rel (%p2954_p8) target bundleno = 3076 (0xc04), region = 68  ;;  %s1900_s30 = sshll.u32 (!%p2954_p8), %s2724_s2, 3 }
  0x99   : > { %s435_s20 = scalar_lea.sflag (!%p2954_p8), [#allocation3], %s2724_s2  ;;  %s2730_s15 = scalar_lea.vmem (!%p2954_p8), [#allocation2], %s1900_s30 }
  0x9f   : > { %2386 = dma.done.wait (%p2667_p6), %s435_s20, 128  }
  0xa0   : > { %2388 = vsyncadd (%p2667_p6), %s435_s20, 4294967168  ;;  %p2955_p4 = scmp.eq.s32.totalorder %s2517_s27, 0 }
  0xa2   : > { %2390 = dma.done.wait (%p2955_p4), [#allocation6], 1024   ;;  %p2956_p10 = pmov %p2955_p4 }
  0xa3   : > { %p2957_p11 = pmov %p2955_p4 }
  0xa4   : > { %2392 = vsyncadd (%p2956_p10), [#allocation6], 4294966272 }
  0xa5   : > { %2394 = dma.done.wait (%p2957_p11), [#allocation9], 1024   ;;  %p2958_p1 = pmov %p2955_p4 }
  0xa6   : > { %v2424_v0 = vmov 0.0|0.0   ;;  %vm2425_vm0 = vmmov 0   ;;  %v2426_v1 = vmov 0.0   ;;  %v588_v2 = vld [vmem:[#allocation7] sm:$0xff]  ;;  %v589_v3 = vld [vmem:[#allocation7 + $0x8] sm:$0xff]  ;;  %v590_v7 = vld [vmem:[#allocation7 + $0x10] sm:$0xff] }
  0xa7   : > { %2396 = vsyncadd (%p2958_p1), [#allocation9], 4294966272  ;;  %2074 = vmatprep.subr.bf16.mxu1 %v2424_v0  ;;  %2068 = vmatprep.subr.bf16.mxu0 %v2424_v0  ;;  %v503_v4 = vld [vmem:[#allocation5] sm:$0xff]  ;;  %v2075_v5 = vpack.c.bf16 %v589_v3, %v588_v2  ;;  %v504_v6 = vld [vmem:[#allocation5 + $0x8] sm:$0xff]  ;;  %vm514_vm1 = vcmask 261120   ;;  %vm754_vm2 = vcmask 64512  }
  0xa8   : > { %1994 = vmatprep.mubr.msk.f32.mxu1 %vm2425_vm0, %v2426_v1  ;;  %1983 = vmatprep.mubr.msk.f32.mxu0 %vm2425_vm0, %v2426_v1  ;;  %v591_v8 = vld [vmem:[#allocation7 + $0x18] sm:$0xff]  ;;  %v2069_v9 = vpack.c.bf16 %v504_v6, %v503_v4  ;;  %v505_v10 = vld [vmem:[#allocation5 + $0x10] sm:$0xff]  ;;  %v669_v15 = vld [vmem:[#allocation8] sm:$0xff]  ;;  %s2427_s10 = smov 120   ;;  %p498_p6 = scmp.lt.s32.totalorder %s2517_s27, 1 }
  0xa9   : > { %v506_v11 = vld [vmem:[#allocation5 + $0x18] sm:$0xff]  ;;  %2076 = vmatpush3.bf16.msra.mxu1 %v2075_v5  ;;  %v2078_v12 = vpack.c.bf16 %v591_v8, %v590_v7  ;;  %v670_v16 = vld [vmem:[#allocation8 + $0x8] sm:$0xff]  ;;  %v671_v17 = vld [vmem:[#allocation8 + $0x10] sm:$0xff]  ;;  %s2429_s28 = smov 104   ;;  %s2959_s13 = sld [smem:[#allocation18_spill]] }
  0xaa   : > { %2070 = vmatpush3.bf16.msra.mxu0 %v2069_v9  ;;  %2077 = vmatprep.subr.bf16.mxu1 %v2424_v0  ;;  %v2072_v13 = vpack.c.bf16 %v506_v11, %v505_v10  ;;  %v2749_v14 = vld [vmem:[%s2730_s15] sm:$0xff]  ;;  %v2081_v18 = vpack.c.bf16 %v670_v16, %v669_v15  ;;  %s499_s9 = scalar_select %p498_p6, %s2517_s27, 1  ;;  %v751_v59 = vld [vmem:[#allocation10 + $0x8] sm:$0xff] }
  0xab   : > { %2071 = vmatprep.subr.bf16.mxu0 %v2424_v0  ;;  %v672_v19 = vld [vmem:[#allocation8 + $0x18] sm:$0xff]  ;;  %v1908_v21 = vld [vmem:[%s2925_s5] ss:$0 sm:$0xff]  ;;  %s2428_s15 = smov 112   ;;  %s2960_s18 = sld [smem:[#allocation19_spill]] }
  0xac   : > { %v2084_v20 = vpack.c.bf16 %v672_v19, %v671_v17  ;;  %v1906_v22 = vld [vmem:[%s2923_s3] ss:$0 sm:$0xff]  ;;  %s500_s20 = scalar_lea.vmem %s2921_s1, %s499_s9  ;;  %s2961_s16 = sld [smem:[#allocation20_spill]] }
  0xad   : > { %2079 = vmatpush3.bf16.msra.mxu1 %v2078_v12  ;;  %v1910_v29 = vld [vmem:[%s2927_s7] ss:$0 sm:$0xff]  ;;  %p2963_p7 = scmp.ne.s32.totalorder %s2950_s11, 0 }
  0xae   : > { %2073 = vmatpush3.bf16.msra.mxu0 %v2072_v13  ;;  %2008 = vmatprep.subr.mxu1 %v2426_v1  ;;  %v2799_v36 = vld [vmem:[%s500_s20] ss:$0 sm:$0xff]  ;;  %s1933_s20 = sshll.u32 %s2517_s27, 7  ;;  %s2430_s27 = smov [#allocation11]  }
  0xaf   : > { %2080 = vmatprep.subr.bf16.mxu0 %v2424_v0 }
  0xb0   : > { %1995 = vmatmul.mubr.msk.f32.vlgmr.msra.gmra.mrb[0].mxu1 %vm514_vm1, %v2749_v14 }
  0xb1   : > { %1984 = vmatmul.mubr.msk.f32.vlgmr.msra.gmra.mrb[0].mxu0 %vm514_vm1, %v2749_v14  ;;  %2010 = vmatprep.mubr.msk.f32.mxu1 %vm2425_vm0, %v2426_v1 }
  0xb2   : > { %2005 = vmatprep.mubr.msk.f32.mxu0 %vm2425_vm0, %v2426_v1  ;;  %2082 = vmatpush3.bf16.msra.mxu0 %v2081_v18 }
  0xb3   : > { %2083 = vmatprep.subr.bf16.mxu0 %v2424_v0  ;;  %v750_v0 = vld [vmem:[#allocation10] sm:$0xff] }
  0xb6   : > { %2085 = vmatpush3.bf16.msra.mxu0 %v2084_v20 }
  0xb7   : > { %2018 = vmatprep.subr.mxu0 %v2426_v1 }
  0xb9   : > { %2006 = vmatmul.mubr.msk.f32.vlgmr.msra.gmra.mrb[2].mxu0 %vm514_vm1, %v2749_v14 }
  0xba   : > { %2020 = vmatprep.mubr.msk.f32.mxu0 %vm2425_vm0, %v2426_v1 }
 0x183   : > { %v665_v23 = vpop.f32.mrb[0].mxu1 }
 0x184   : > { %v666_v24 = vadd.f32 %v1908_v21, %v665_v23  ;;  %v1996_v25 = vpop.f32.mrb[1].mxu1  ;;  %v584_v26 = vpop.f32.mrb[0].mxu0 }
 0x185   : > { %v2771_v27 = vadd.f32 %v1906_v22, %v584_v26  ;;  %v1985_v28 = vpop.f32.mrb[1].mxu0 }
 0x186   : > { %925 = vrot.lane.b32.xlu0 %v666_v24, %s2427_s10  ;;  %2009 = vmatpush3.xpose.msk.msra.mxu1 %vm754_vm2, %v666_v24 }
 0x187   : > { %2013 = vmatprep.subr.mxu1 %v2426_v1 }
 0x189   : > { %2011 = vmatmul.mubr.msk.f32.vlgmr.msra.gmra.mrb[2].mxu1 %vm754_vm2, %v2771_v27 }
 0x18a   : > { %923 = vrot.lane.b32.xlu0 %v2771_v27, %s2427_s10  ;;  %2015 = vmatprep.mubr.msk.f32.mxu1 %vm2425_vm0, %v2426_v1 }
 0x18c   : > { %v746_v30 = vpop.f32.mrb[2].mxu0 }
 0x18d   : > { %v2785_v31 = vadd.f32 %v1910_v29, %v746_v30  ;;  %v2007_v32 = vpop.f32.mrb[3].mxu0 }
 0x18f   : > { %2014 = vmatpush3.msra.mxu1 %v2785_v31 }
 0x190   : > { %2023 = vmatprep.subr.mxu1 %v2426_v1 }
 0x1f8   : > { %v926_v33 = vpop.permute.xlu0 %925 }
 0x1f9   : > { %2019 = vmatpush3.xpose.msk.msra.mxu0 %vm754_vm2, %v926_v33 }
 0x1fa   : > { %2028 = vmatprep.subr.mxu0 %v2426_v1 }
 0x1fc   : > { %v924_v34 = vpop.permute.xlu0 %923 }
 0x1fd   : > { %2021 = vmatmul.mubr.msk.f32.vlgmr.msra.gmra.mrb[4].mxu0 %vm754_vm2, %v924_v34 }
 0x1fe   : > { %2030 = vmatprep.mubr.msk.f32.mxu0 %vm2425_vm0, %v2426_v1  ;;  %2029 = vmatpush3.msra.mxu0 %v751_v59 }
 0x1ff   : > { %2038 = vmatprep.subr.mxu0 %v2426_v1 }
 0x25c   : > { %v827_v35 = vpop.f32.mrb[2].mxu1 }
 0x25d   : > { %v831_v37 = vmul.f32 0.35355338, %v827_v35  ;;  %v2012_v38 = vpop.f32.mrb[3].mxu1 }
 0x25f   : > { %v838_v39 = vadd.f32 %v2799_v36, %v831_v37 }
 0x261   : > { %v839_v40 = vsel %vm754_vm2, %v838_v39, -inf }
 0x262   : > { %840 = vmax.xlane.f32.xlu1 %v839_v40 }
 0x2d0   : > { %v997_v41 = vpop.f32.mrb[4].mxu0 }
 0x2d1   : > { %v1001_v42 = vmul.f32 0.35355338, %v997_v41  ;;  %v2022_v43 = vpop.f32.mrb[5].mxu0 }
 0x2d3   : > { %v1002_v44 = vadd.f32 %v2799_v36, %v1001_v42 }
 0x2d5   : > { %v1003_v45 = vsel %vm754_vm2, %v1002_v44, -inf }
 0x2d6   : > { %1004 = vmax.xlane.f32.xlu1 %v1003_v45 }
 0x2ef   : > { %v841_v46 = vpop.xlane.xlu1 %840 }
 0x2f0   : > { %v842_v47 = vsub.f32 %v838_v39, %v841_v46 }
 0x2f2   : > { %v843_v48 = vmul.f32 1.442695, %v842_v47 }
 0x2f4   : > { %2181 = vpow2.f32 %v843_v48 }
 0x2fe   : > { %v2182_v49 = vpop.eup %2181 }
 0x2ff   : > { %v845_v50 = vsel %vm754_vm2, %v2182_v49, 0.0 }
 0x300   : > { %846 = vadd.xlane.f32.xlu0 %v845_v50 }
 0x316   : > { %1328 = vrot.lane.b32.xlu0 %v2785_v31, %s2428_s15 }
 0x31a   : > { %1480 = vrot.lane.b32.xlu0 %v666_v24, %s2429_s28 }
 0x363   : > { %v1005_v51 = vpop.xlane.xlu1 %1004 }
 0x364   : > { %v1006_v52 = vsub.f32 %v1002_v44, %v1005_v51 }
 0x366   : > { %v1007_v53 = vmul.f32 1.442695, %v1006_v52 }
 0x368   : > { %2183 = vpow2.f32 %v1007_v53 }
 0x372   : > { %v2184_v54 = vpop.eup %2183 }
 0x373   : > { %v1009_v55 = vsel %vm754_vm2, %v2184_v54, 0.0 }
 0x374   : > { %1010 = vadd.xlane.f32.xlu1 %v1009_v55 }
 0x385   : > { %1015 = vrot.lane.b32.xlu1 %v2785_v31, %s2427_s10  ;;  %s1760_s10 = scalar_lea.sflag [#allocation4], %s2724_s2 }
 0x389   : > { %1239 = vrot.lane.b32.xlu1 %v666_v24, %s2428_s15 }
 0x38d   : > { %v847_v56 = vpop.xlane.xlu0 %846  ;;  %1237 = vrot.lane.b32.xlu1 %v2771_v27, %s2428_s15  ;;  %s497_s15 = scalar_lea.vmem [#allocation11], %s1900_s30  ;;  %s2345_s30 = sshll.u32 %s2430_s27, 4  ;;  %s2346_s30 = int_to_ptr.vmem [resolvable:$false] %s2345_s30 }
 0x38e   : > { %2185 = vrcp.f32 %v847_v56 }
 0x391   : > { %v1329_v3 = vpop.permute.xlu0 %1328 }
 0x395   : > { %v1481_v25 = vpop.permute.xlu0 %1480 }
 0x398   : > { %v2186_v57 = vpop.eup %2185 }
 0x399   : > { %v849_v58 = vmul.f32 %v2186_v57, %v2182_v49 }
 0x39b   : > { %2016 = vmatmul.mubr.msk.f32.vlgmr.msra.gmra.mrb[4].mxu1 %vm754_vm2, %v849_v58 }
 0x39c   : > { %2025 = vmatprep.mubr.msk.f32.mxu1 %vm2425_vm0, %v2426_v1 }
 0x401   : > { %v1011_v60 = vpop.xlane.xlu1 %1010 }
 0x402   : > { %2187 = vrcp.f32 %v1011_v60 }
 0x405   : > { %v1016_v61 = vpop.permute.xlu1 %1015 }
 0x406   : > { %2024 = vmatpush3.msra.mxu1 %v1016_v61 }
 0x407   : > { %2033 = vmatprep.subr.mxu1 %v2426_v1 }
 0x409   : > { %v1240_v5 = vpop.permute.xlu1 %1239 }
 0x40c   : > { %v2188_v62 = vpop.eup %2187 }
 0x40d   : > { %v1013_v63 = vmul.f32 %v2188_v62, %v2184_v54  ;;  %v1238_v8 = vpop.permute.xlu1 %1237 }
 0x40f   : > { %2026 = vmatmul.mubr.msk.f32.vlgmr.msra.gmra.mrb[6].mxu1 %vm754_vm2, %v1013_v63 }
 0x410   : > { %2034 = vmatpush3.msra.mxu1 %v750_v0  ;;  %2035 = vmatprep.mubr.msk.f32.mxu1 %vm2425_vm0, %v2426_v1 }
 0x411   : > { %2043 = vmatprep.subr.mxu1 %v2426_v1 }
 0x46e   : > { %v919_v2 = vpop.f32.mrb[4].mxu1 }
 0x46f   : > { %v2017_v4 = vpop.f32.mrb[5].mxu1  ;;  %2036 = vmatmul.mubr.msk.f32.vlgmr.msra.gmra.mrb[8].mxu1 %vm754_vm2, %v919_v2 }
 0x470   : > { %2044 = vmatpush3.msra.mxu1 %v1329_v3  ;;  %2045 = vmatprep.mubr.msk.f32.mxu1 %vm2425_vm0, %v2426_v1 }
 0x471   : > { %2053 = vmatprep.subr.mxu1 %v2426_v1 }
 0x4e2   : > { %v1087_v6 = vpop.f32.mrb[6].mxu1 }
 0x4e3   : > { %v2027_v7 = vpop.f32.mrb[7].mxu1  ;;  %2031 = vmatmul.mubr.msk.f32.vlgmr.msra.gmra.mrb[6].mxu0 %vm754_vm2, %v1087_v6  ;;  %v1931_v6 = vld [vmem:[%s2961_s16] ss:$0 sm:$0xff] }
 0x4e4   : > { %2039 = vmatpush3.xpose.msk.msra.mxu0 %vm754_vm2, %v1240_v5  ;;  %2040 = vmatprep.mubr.msk.f32.mxu0 %vm2425_vm0, %v2426_v1 }
 0x4e5   : > { %2048 = vmatprep.subr.mxu0 %v2426_v1 }
 0x4e7   : > { %2041 = vmatmul.mubr.msk.f32.vlgmr.msra.gmra.mrb[8].mxu0 %vm754_vm2, %v1238_v8 }
 0x4e8   : > { %2050 = vmatprep.mubr.msk.f32.mxu0 %vm2425_vm0, %v2426_v1 }
 0x542   : > { %v1233_v9 = vpop.f32.mrb[8].mxu1 }
 0x543   : > { %v2037_v10 = vpop.f32.mrb[9].mxu1 }
 0x5b6   : > { %v1160_v11 = vpop.f32.mrb[6].mxu0 }
 0x5b7   : > { %v1234_v12 = vadd.f32 %v1233_v9, %v1160_v11  ;;  %v2032_v13 = vpop.f32.mrb[7].mxu0 }
 0x5ba   : > { %v1311_v15 = vpop.f32.mrb[8].mxu0 }
 0x5bb   : > { %v1315_v16 = vmul.f32 0.35355338, %v1311_v15  ;;  %v2042_v17 = vpop.f32.mrb[9].mxu0 }
 0x5bd   : > { %v1316_v18 = vadd.f32 %v2799_v36, %v1315_v16 }
 0x5bf   : > { %v1317_v19 = vsel %vm754_vm2, %v1316_v18, -inf }
 0x5c0   : > { %1318 = vmax.xlane.f32.xlu1 %v1317_v19 }
 0x64d   : > { %v1319_v20 = vpop.xlane.xlu1 %1318 }
 0x64e   : > { %v1320_v21 = vsub.f32 %v1316_v18, %v1319_v20 }
 0x650   : > { %v1321_v22 = vmul.f32 1.442695, %v1320_v21 }
 0x652   : > { %2189 = vpow2.f32 %v1321_v22 }
 0x65c   : > { %v2190_v23 = vpop.eup %2189 }
 0x65d   : > { %v1323_v24 = vsel %vm754_vm2, %v2190_v23, 0.0 }
 0x65e   : > { %1324 = vadd.xlane.f32.xlu0 %v1323_v24 }
 0x674   : > { %1478 = vrot.lane.b32.xlu0 %v2771_v27, %s2429_s28  ;;  %v752_v27 = vld [vmem:[#allocation10 + $0x10] sm:$0xff] }
 0x675   : > { %2049 = vmatpush3.msra.mxu0 %v752_v27 }
 0x676   : > { %2058 = vmatprep.subr.mxu0 %v2426_v1 }
 0x6eb   : > { %v1325_v26 = vpop.xlane.xlu0 %1324 }
 0x6ec   : > { %2191 = vrcp.f32 %v1325_v26 }
 0x6ef   : > { %v1479_v30 = vpop.permute.xlu0 %1478 }
 0x6f6   : > { %v2192_v28 = vpop.eup %2191 }
 0x6f7   : > { %v1327_v29 = vmul.f32 %v2192_v28, %v2190_v23 }
 0x6f9   : > { %2046 = vmatmul.mubr.msk.f32.vlgmr.msra.gmra.mrb[10].mxu1 %vm754_vm2, %v1327_v29 }
 0x6fa   : > { %2054 = vmatpush3.xpose.msk.msra.mxu1 %vm754_vm2, %v1481_v25  ;;  %2055 = vmatprep.mubr.msk.f32.mxu1 %vm2425_vm0, %v2426_v1 }
 0x6fb   : > { %2063 = vmatprep.subr.mxu1 %v2426_v1 }
 0x6fd   : > { %2056 = vmatmul.mubr.msk.f32.vlgmr.msra.gmra.mrb[12].mxu1 %vm754_vm2, %v1479_v30 }
 0x6fe   : > { %2065 = vmatprep.mubr.msk.f32.mxu1 %vm2425_vm0, %v2426_v1 }
 0x7cc   : > { %v1400_v32 = vpop.f32.mrb[10].mxu1 }
 0x7cd   : > { %v2047_v33 = vpop.f32.mrb[11].mxu1  ;;  %2051 = vmatmul.mubr.msk.f32.vlgmr.msra.gmra.mrb[10].mxu0 %vm754_vm2, %v1400_v32 }
 0x7ce   : > { %2060 = vmatprep.mubr.msk.f32.mxu0 %vm2425_vm0, %v2426_v1  ;;  %v753_v1 = vld [vmem:[#allocation10 + $0x18] sm:$0xff] }
 0x7cf   : > { %2064 = vmatpush3.msra.mxu1 %v753_v1 }
 0x7d0   : > { %v1552_v34 = vpop.f32.mrb[12].mxu1 }
 0x7d1   : > { %v1556_v35 = vmul.f32 0.35355338, %v1552_v34  ;;  %v2057_v37 = vpop.f32.mrb[13].mxu1 }
 0x7d3   : > { %v1557_v38 = vadd.f32 %v2799_v36, %v1556_v35 }
 0x7d5   : > { %v1558_v39 = vsel %vm754_vm2, %v1557_v38, -inf }
 0x7d6   : > { %1559 = vmax.xlane.f32.xlu0 %v1558_v39 }
 0x863   : > { %v1560_v40 = vpop.xlane.xlu0 %1559 }
 0x864   : > { %v1561_v41 = vsub.f32 %v1557_v38, %v1560_v40 }
 0x866   : > { %v1562_v42 = vmul.f32 1.442695, %v1561_v41 }
 0x868   : > { %2193 = vpow2.f32 %v1562_v42 }
 0x872   : > { %v2194_v43 = vpop.eup %2193 }
 0x873   : > { %v1564_v44 = vsel %vm754_vm2, %v2194_v43, 0.0 }
 0x874   : > { %1565 = vadd.xlane.f32.xlu1 %v1564_v44 }
 0x885   : > { %1569 = vrot.lane.b32.xlu1 %v2785_v31, %s2429_s28  ;;  %v1929_v31 = vld [vmem:[%s2959_s13] ss:$0 sm:$0xff]  ;;  %s1773_s28 = sshll.u32 %s497_s15, 4  ;;  %s2962_s13 = sld [smem:[#allocation21_spill]]  ;;  %s2877_s28 = int_to_ptr.vmem [resolvable:$true] %s1773_s28 }
 0x886   : > { %s2341_s12 = scalar_lea.vmem %s2877_s28, 128  ;;  %p2348_p3 = scmp.lt.s32.totalorder %s2877_s28, %s2346_s30 }
 0x887   : > { %p2342_p5 = scmp.ne.s32.totalorder %s2877_s28, %s2341_s12 }
 0x889   : > { %p2343_p9 = pnand %p2342_p5, %p2963_p7 }
 0x88b   : > { %s2875_s0 = scalar_lea.hbm %s2962_s13, %s1933_s20  ;;  %p2344_p12 = pneg %p2343_p9 }
 0x8a0   : > { %v1473_v45 = vpop.f32.mrb[10].mxu0 }
 0x8a1   : > { %v1477_v46 = vadd.f32 %v1473_v45, %v1234_v12  ;;  %v2052_v47 = vpop.f32.mrb[11].mxu0 }
 0x901   : > { %v1566_v36 = vpop.xlane.xlu1 %1565 }
 0x902   : > { %2195 = vrcp.f32 %v1566_v36 }
 0x905   : > { %v1570_v48 = vpop.permute.xlu1 %1569 }
 0x906   : > { %2059 = vmatpush3.msra.mxu0 %v1570_v48 }
 0x90c   : > { %v2196_v49 = vpop.eup %2195 }
 0x90d   : > { %v1568_v50 = vmul.f32 %v2196_v49, %v2194_v43 }
 0x90f   : > { %2061 = vmatmul.mubr.msk.f32.vlgmr.msra.gmra.mrb[12].mxu0 %vm754_vm2, %v1568_v50 }
 0x9e2   : > { %v1641_v51 = vpop.f32.mrb[12].mxu0 }
 0x9e3   : > { %v2062_v52 = vpop.f32.mrb[13].mxu0  ;;  %2066 = vmatmul.mubr.msk.f32.vlgmr.msra.gmra.mrb[14].mxu1 %vm754_vm2, %v1641_v51 }
 0xab6   : > { %v1714_v53 = vpop.f32.mrb[14].mxu1 }
 0xab7   : > { %v1718_v54 = vadd.f32 %v1714_v53, %v1477_v46  ;;  %v2067_v55 = vpop.f32.mrb[15].mxu1 }
 0xab9   : > { %v1726_v56 = vadd.f32 %v1929_v31, %v1718_v54 }
 0xabb   : > { %v1727_v57 = vadd.f32 %v1726_v56, %v2749_v14  ;;  %v1930_v14 = vld [vmem:[%s2960_s18] ss:$0 sm:$0xff]  ;;  %s2347_s18 = scalar_lea.vmem %s2346_s30, 256 }
 0xabc   : > { %p2349_p13 = scmp.lt.s32.totalorder %s2347_s18, %s2341_s12 }
 0xabd   : > { %v1728_v58 = vsel %vm514_vm1, %v1727_v57, 0.0 }
 0xabe   : > { %1729 = vadd.xlane.f32.xlu1 %v1728_v58  ;;  %p2350_p0 = por %p2349_p13, %p2348_p3 }
 0xac0   : > { %p2351_p2 = pnand %p2350_p0, %p2344_p12 }
 0xb4b   : > { %v1730_v59 = vpop.xlane.xlu1 %1729 }
 0xb4c   : > { %v1732_v60 = vmul.f32 0.03125, %v1730_v59 }
 0xb4e   : > { %v1733_v61 = vsub.f32 %v1727_v57, %v1732_v60 }
 0xb50   : > { %v1734_v62 = vmul.f32 %v1733_v61, %v1733_v61 }
 0xb52   : > { %v1735_v63 = vsel %vm514_vm1, %v1734_v62, 0.0 }
 0xb53   : > { %1736 = vadd.xlane.f32.xlu0 %v1735_v63 }
 0xbe0   : > { %v1737_v0 = vpop.xlane.xlu0 %1736 }
 0xbe1   : > { %v1738_v2 = vmul.f32 0.03125, %v1737_v0 }
 0xbe3   : > { %v1739_v3 = vadd.f32 1e-12, %v1738_v2 }
 0xbe5   : > { %2197 = vrsqrt.f32 %v1739_v3 }
 0xbef   : > { %v2198_v4 = vpop.eup %2197 }
 0xbf0   : > { %v1741_v5 = vmul.f32 %v2198_v4, %v1733_v61 }
 0xbf2   : > { %v1749_v7 = vmul.f32 %v1930_v14, %v1741_v5 }
 0xbf4   : > { %v1757_v8 = vadd.f32 %v1931_v6, %v1749_v7 }
 0xbf6   : > { %1758 = vst.msk [vmem:[%s497_s15] sm:$0xff] %vm514_vm1, %v1757_v8 }
 0xbf7   : > { %2354 = shalt.err (!%p2351_p2)
}
 0xbf8   : > { %s2355_s2 = scalar_lea.hbm %s2875_s0, 128  ;;  %s2359_s16 = scalar_lea.hbm %s2962_s13, 256 }
 0xbf9   : > { %p2356_p8 = scmp.ne.s32.totalorder %s2875_s0, %s2355_s2  ;;  %p2360_p11 = scmp.lt.u32.totalorder %s2875_s0, %s2962_s13 }
 0xbfa   : > { %p2361_p1 = scmp.lt.u32.totalorder %s2359_s16, %s2355_s2  ;;  %p2363_p5 = scmp.lt.u32.totalorder %s2355_s2, %s2875_s0 }
 0xbfb   : > { %p2357_p4 = pnand %p2356_p8, %p2963_p7 }
 0xbfc   : > { %p2362_p6 = por %p2361_p1, %p2360_p11 }
 0xbfd   : > { %p2358_p10 = pneg %p2357_p4 }
 0xbfe   : > { %p2364_p9 = por %p2363_p5, %p2362_p6 }
 0xc00   : > { %p2365_p12 = pnand %p2364_p9, %p2358_p10 }
 0xc02   : > { %2368 = shalt.err (!%p2365_p12)
}
 0xc03   : > { %2104 = dma.vmem_to_hbm [thread:$0]  (%p2963_p7), %s2877_s28, 128, %s2875_s0, %s1760_s10  }
 0xc04 PF: > { %s1785_s17 = sand.u32 1, %s2403_s21   ;;  %p2964_p3 = scmp.ne.s32.totalorder %s2951_s29, 0 }
 0xc05   : > { %p2965_p13 = scmp.ge.s32.totalorder %s2415_s24, 2  ;;  %s1786_s26 = scalar_lea.sflag [#allocation4], %s1785_s17 }
 0xc07   : > { %p2124_p0 = pnand %p2965_p13, %p2964_p3 }
 0xc09   : > { %2398 = dma.done.wait (!%p2124_p0), %s1786_s26, 128  }
 0xc0a   : > { %2400 = vsyncadd (!%p2124_p0), %s1786_s26, 4294967168  ;;  %p27_p2 = scmp.ge.s32.totalorder %s2648_s25, 4   ;;  %s2966_s21 = smov %s2407_s22 }
 0xc0b   : > { %s2967_s22 = smov %s2411_s23  ;;  %s2968_s23 = smov %s2659_s19 }
 0xc0c   : > { %s2969_s24 = smov %s2648_s25  ;;  %29 = sbr.rel (!%p27_p2) target bundleno = 14 (0xe), region = 132 }
 0xc13   :  { %1791 = vsyncpa [#allocation3], 1 }
 0xc14   :  { %1793 = vsyncpa [#allocation3 + $0x1], 1 }
 0xc15   :  { %1794 = vsyncpa [#allocation6], 1 }
 0xc16   :  { %1795 = vsyncpa [#allocation9], 1 }
 0xc17   :  { %1796 = vsyncpa [#allocation4], 1 }
 0xc18   :  { %1798 = vsyncpa [#allocation4 + $0x1], 1 }

</bundles_post_ra>
